<compile_context>
chip_gen: v7x
topology: tpu7x:2x2x1
jax: 0.10.0
libtpu: 0.0.40
codegen_flags: <defaults>
</compile_context>

<pallas_src>
import jax
import jax.numpy as jnp
from jax.experimental import pallas as pl
from jax.experimental.pallas import tpu as pltpu


def mlp_kernel(x_ref, w1_ref, b1_ref, w2_ref, b2_ref, o_ref):
    # x_ref:  (C_in,  TILE_S)   -- spatial on lanes (batch dim squeezed away)
    # w1_ref: (C_hid, C_in),  b1_ref: (C_hid, 1)
    # w2_ref: (C_out, C_hid), b2_ref: (C_out, 1)
    # o_ref:  (C_out, TILE_S)
    x = x_ref[...]                                                   # (C_in, TILE_S)
    h = jnp.dot(w1_ref[...], x, preferred_element_type=jnp.float32) + b1_ref[...]
    h = jnp.clip(h, 0.0, 6.0)                                        # ReLU6
    # TODO(synk): Dropout(p=0.0) is identity; non-zero p in training mode would need pltpu.prng_* masking.
    o = jnp.dot(w2_ref[...].astype(jnp.float32), h,
                preferred_element_type=jnp.float32) + b2_ref[...]
    o_ref[...] = o.astype(o_ref.dtype)                               # lane-dense store


def _pick_spatial_tile(spatial, c_in, c_hid, c_out, vmem_budget_bytes=8 << 20):
    """Largest multiple-of-128 divisor of `spatial` that keeps the double-buffered
    activation tiles (in + hidden + out, fp32) under `vmem_budget_bytes`; fall back
    to the full extent (always a legal block) so no padding copy is ever required."""
    if spatial % 128 != 0:
        return spatial
    bytes_per_col = 4 * (2 * c_in + c_hid + 2 * c_out)   # dbl-buffered in/out + hidden
    max_tile = max(128, (vmem_budget_bytes // bytes_per_col) // 128 * 128)
    max_tile = min(max_tile, spatial)
    if spatial <= max_tile:
        return spatial
    for t in range(max_tile, 127, -128):
        if spatial % t == 0:
            return t
    return spatial


def mlp_pallas(x_nchw, w1t, b1, w2t, b2):
    """x_nchw: (N, C_in, H, W).
    w1t: (C_hid, C_in)  (== PyTorch conv1 weight[:, :, 0, 0]),  b1: (C_hid,)
    w2t: (C_out, C_hid) (== PyTorch conv2 weight[:, :, 0, 0]),  b2: (C_out,)
    Returns (N, C_out, H, W)."""
    N, C_in, H, W = x_nchw.shape
    C_hid = w1t.shape[0]
    C_out = w2t.shape[0]
    spatial = H * W

    # NCHW is already (N, C, H*W) — this reshape is free (no data movement).
    x_flat = x_nchw.reshape(N, C_in, spatial)
    b1_2d = b1.reshape(C_hid, 1).astype(jnp.float32)
    b2_2d = b2.reshape(C_out, 1).astype(jnp.float32)

    tile_s = _pick_spatial_tile(spatial, C_in, C_hid, C_out)
    n_s = spatial // tile_s
    grid = (N, n_s)

    out_flat = pl.pallas_call(
        mlp_kernel,
        out_shape=jax.ShapeDtypeStruct((N, C_out, spatial), x_nchw.dtype),
        grid_spec=pltpu.PrefetchScalarGridSpec(
            num_scalar_prefetch=0,
            grid=grid,
            in_specs=[
                pl.BlockSpec((pl.Squeezed(), C_in, tile_s), lambda n, s: (n, 0, s)),
                pl.BlockSpec((C_hid, C_in), lambda n, s: (0, 0)),
                pl.BlockSpec((C_hid, 1), lambda n, s: (0, 0)),
                pl.BlockSpec((C_out, C_hid), lambda n, s: (0, 0)),
                pl.BlockSpec((C_out, 1), lambda n, s: (0, 0)),
            ],
            out_specs=pl.BlockSpec((pl.Squeezed(), C_out, tile_s),
                                   lambda n, s: (n, 0, s)),
        ),
        compiler_params=pltpu.CompilerParams(
            dimension_semantics=("parallel", "parallel"),
        ),
    )(x_flat, w1t, b1_2d, w2t, b2_2d)

    return out_flat.reshape(N, C_out, H, W)


def mlp_reference(x_nchw, w1t, b1, w2t, b2):
    """Pure-JAX reference matching the PyTorch forward (eval / drop=0)."""
    h = jnp.einsum("nchw,dc->ndhw", x_nchw, w1t) + b1[None, :, None, None]
    h = jnp.clip(h, 0.0, 6.0)
    o = jnp.einsum("ndhw,ed->nehw", h, w2t) + b2[None, :, None, None]
    return o


if __name__ == "__main__":
    key = jax.random.PRNGKey(0)
    k_x, k_w1, k_b1, k_w2, k_b2 = jax.random.split(key, 5)

    # Shapes consistent with the module: in_features=4, hidden_features=32,
    # out_features defaults to in_features=4; input is NCHW (2, 4, 16, 16).
    N, C_in, H, W = 2, 4, 16, 16
    C_hid = 32
    C_out = C_in

    x = jax.random.normal(k_x, (N, C_in, H, W), dtype=jnp.float32)

    # Parameters in conv layout: weight (C_out_layer, C_in_layer) == conv weight squeezed.
    w1t = 0.1 * jax.random.normal(k_w1, (C_hid, C_in), dtype=jnp.float32)
    b1 = 0.05 * jax.random.normal(k_b1, (C_hid,), dtype=jnp.float32)
    w2t = 0.1 * jax.random.normal(k_w2, (C_out, C_hid), dtype=jnp.float32)
    b2 = 0.05 * jax.random.normal(k_b2, (C_out,), dtype=jnp.float32)

    out = mlp_pallas(x, w1t, b1, w2t, b2)
    out = jax.block_until_ready(out)

    ref = mlp_reference(x, w1t, b1, w2t, b2)
    assert out.shape == (N, C_out, H, W), out.shape
    assert jnp.allclose(out, ref, atol=1e-5, rtol=1e-5), float(jnp.max(jnp.abs(out - ref)))

    print("KERNEL_OK")
</pallas_src>

<mosaic_0001>
module attributes {stable_mosaic.version = 11 : i64} {
  func.func @mlp_kernel(%arg0: i32, %arg1: i32, %arg2: memref<1x4x256xf32, #tpu.memory_space<vmem>>, %arg3: memref<32x4xf32, #tpu.memory_space<vmem>>, %arg4: memref<32x1xf32, #tpu.memory_space<vmem>>, %arg5: memref<4x32xf32, #tpu.memory_space<vmem>>, %arg6: memref<4x1xf32, #tpu.memory_space<vmem>>, %arg7: memref<1x4x256xf32, #tpu.memory_space<vmem>>) attributes {dimension_semantics = [#tpu.dimension_semantics<parallel>, #tpu.dimension_semantics<parallel>], iteration_bounds = array<i64: 2, 1>, scalar_prefetch = 0 : i64, scratch_operands = 0 : i64, tpu.core_type = #tpu.core_type<tc>, window_params = [{transform_indices = @transform_0, window_bounds = array<i64: 1, 4, 256>}, {pipeline_mode = #tpu.pipeline_mode<synchronous>, transform_indices = @transform_1, window_bounds = array<i64: 32, 4>}, {pipeline_mode = #tpu.pipeline_mode<synchronous>, transform_indices = @transform_2, window_bounds = array<i64: 32, 1>}, {pipeline_mode = #tpu.pipeline_mode<synchronous>, transform_indices = @transform_3, window_bounds = array<i64: 4, 32>}, {pipeline_mode = #tpu.pipeline_mode<synchronous>, transform_indices = @transform_4, window_bounds = array<i64: 4, 1>}, {transform_indices = @transform_5, window_bounds = array<i64: 1, 4, 256>}]} {
    %c0 = arith.constant 0 : index
    %c0_0 = arith.constant 0 : index
    %c0_1 = arith.constant 0 : index
    %0 = vector.load %arg2[%c0, %c0_0, %c0_1] : memref<1x4x256xf32, #tpu.memory_space<vmem>>, vector<1x4x256xf32>
    %1 = vector.shape_cast %0 : vector<1x4x256xf32> to vector<4x256xf32>
    %c0_2 = arith.constant 0 : index
    %c0_3 = arith.constant 0 : index
    %2 = vector.load %arg3[%c0_2, %c0_3] : memref<32x4xf32, #tpu.memory_space<vmem>>, vector<32x4xf32>
    %cst = arith.constant dense<0.000000e+00> : vector<32x256xf32>
    %3 = tpu.matmul %2, %1, %cst {dimension_numbers = #tpu.dot_dimension_numbers<[1], [0], [0], [1], [0, 0, 1, 1], [], []>} : vector<32x4xf32>, vector<4x256xf32>, vector<32x256xf32> -> vector<32x256xf32>
    %c0_4 = arith.constant 0 : index
    %c0_5 = arith.constant 0 : index
    %4 = vector.load %arg4[%c0_4, %c0_5] : memref<32x1xf32, #tpu.memory_space<vmem>>, vector<32x1xf32>
    %5 = vector.broadcast %4 : vector<32x1xf32> to vector<32x256xf32>
    %6 = arith.addf %3, %5 : vector<32x256xf32>
    %cst_6 = arith.constant 0.000000e+00 : f32
    %cst_7 = arith.constant 6.000000e+00 : f32
    %7 = vector.broadcast %cst_6 : f32 to vector<32x256xf32>
    %8 = arith.maximumf %7, %6 : vector<32x256xf32>
    %9 = vector.broadcast %cst_7 : f32 to vector<32x256xf32>
    %10 = arith.minimumf %9, %8 : vector<32x256xf32>
    %c0_8 = arith.constant 0 : index
    %c0_9 = arith.constant 0 : index
    %11 = vector.load %arg5[%c0_8, %c0_9] : memref<4x32xf32, #tpu.memory_space<vmem>>, vector<4x32xf32>
    %cst_10 = arith.constant dense<0.000000e+00> : vector<4x256xf32>
    %12 = tpu.matmul %11, %10, %cst_10 {dimension_numbers = #tpu.dot_dimension_numbers<[1], [0], [0], [1], [0, 0, 1, 1], [], []>} : vector<4x32xf32>, vector<32x256xf32>, vector<4x256xf32> -> vector<4x256xf32>
    %c0_11 = arith.constant 0 : index
    %c0_12 = arith.constant 0 : index
    %13 = vector.load %arg6[%c0_11, %c0_12] : memref<4x1xf32, #tpu.memory_space<vmem>>, vector<4x1xf32>
    %14 = vector.broadcast %13 : vector<4x1xf32> to vector<4x256xf32>
    %15 = arith.addf %12, %14 : vector<4x256xf32>
    %c0_13 = arith.constant 0 : index
    %c0_14 = arith.constant 0 : index
    %c0_15 = arith.constant 0 : index
    %16 = vector.load %arg7[%c0_13, %c0_14, %c0_15] : memref<1x4x256xf32, #tpu.memory_space<vmem>>, vector<1x4x256xf32>
    %17 = vector.shape_cast %16 : vector<1x4x256xf32> to vector<4x256xf32>
    %18 = vector.shape_cast %15 : vector<4x256xf32> to vector<1x4x256xf32>
    tpu.vector_store %arg7[%c0_13, %c0_14, %c0_15], %18 {strides = array<i32>} : memref<1x4x256xf32, #tpu.memory_space<vmem>>, vector<1x4x256xf32>,
    return
  }
  func.func @transform_0(%arg0: i32, %arg1: i32) -> (i32, i32, i32) {
    %c0_i32 = arith.constant 0 : i32
    %c0_i32_0 = arith.constant 0 : i32
    return %arg0, %c0_i32, %arg1 : i32, i32, i32
  }
  func.func @transform_1(%arg0: i32, %arg1: i32) -> (i32, i32) {
    %c0_i32 = arith.constant 0 : i32
    %c0_i32_0 = arith.constant 0 : i32
    %c0_i32_1 = arith.constant 0 : i32
    return %c0_i32, %c0_i32_0 : i32, i32
  }
  func.func @transform_2(%arg0: i32, %arg1: i32) -> (i32, i32) {
    %c0_i32 = arith.constant 0 : i32
    %c0_i32_0 = arith.constant 0 : i32
    %c0_i32_1 = arith.constant 0 : i32
    return %c0_i32, %c0_i32_0 : i32, i32
  }
  func.func @transform_3(%arg0: i32, %arg1: i32) -> (i32, i32) {
    %c0_i32 = arith.constant 0 : i32
    %c0_i32_0 = arith.constant 0 : i32
    %c0_i32_1 = arith.constant 0 : i32
    return %c0_i32, %c0_i32_0 : i32, i32
  }
  func.func @transform_4(%arg0: i32, %arg1: i32) -> (i32, i32) {
    %c0_i32 = arith.constant 0 : i32
    %c0_i32_0 = arith.constant 0 : i32
    %c0_i32_1 = arith.constant 0 : i32
    return %c0_i32, %c0_i32_0 : i32, i32
  }
  func.func @transform_5(%arg0: i32, %arg1: i32) -> (i32, i32, i32) {
    %c0_i32 = arith.constant 0 : i32
    %c0_i32_0 = arith.constant 0 : i32
    return %arg0, %c0_i32, %arg1 : i32, i32, i32
  }
}

</mosaic_0001>

<bundles_post_ra>
// kernel: tpu_custom_call.1
= control target key start
LH: loop header
LB: loop body
LE: loop exit
PB: predicated region body
PF: predicated region fallthrough
CT: control target
= control target key end

     0   :  { %10 = vsyncpa [#allocation3], 0  ;;  %s933_s0 = inlined_call_operand.vmem [shape: f32[2,4,256], index: 0, kind: input, shape index: {}]   ;;  %s934_s1 = inlined_call_operand.vmem [shape: f32[32,4], index: 1, kind: input, shape index: {}]   ;;  %s935_s2 = inlined_call_operand.vmem [shape: f32[32,1], index: 2, kind: input, shape index: {}]   ;;  %s936_s3 = inlined_call_operand.vmem [shape: f32[4,32], index: 3, kind: input, shape index: {}]   ;;  %s937_s4 = inlined_call_operand.vmem [shape: f32[4,1], index: 4, kind: input, shape index: {}]   ;;  %s938_s5 = inlined_call_operand.hbm [shape: f32[2,4,256], index: 5, kind: output, shape index: {}]  }
   0x1   :  { %12 = vsyncpa [#allocation3 + $0x1], 0  ;;  %s791_s18 = smov 0   ;;  %s793_s19 = smov 0  }
   0x2   :  { %s795_s20 = smov 0   ;;  %s797_s21 = smov 0  }
   0x3   :  { %s799_s22 = smov 0   ;;  %s801_s23 = smov 0  }
   0x4 LB: > { %s588_s24 = sadd.s32 4294967295, %s756_s23   ;;  %s589_s25 = sadd.s32 4294967294, %s756_s23   ;;  %s756_s23 = sphi %s801_s23, %s18_s23   ;;  %s752_s22 = sphi %s799_s22, %s945_s22   ;;  %s748_s21 = sphi %s797_s21, %s944_s21   ;;  %s744_s20 = sphi %s795_s20, %s943_s20   ;;  %s740_s19 = sphi %s793_s19, %s942_s19   ;;  %s736_s18 = sphi %s791_s18, %s941_s18  }
   0x5   : > { %s30_s26 = sadd.s32 1, %s752_s22  ;;  %s151_s27 = sadd.s32 1, %s744_s20 }
   0x6   : > { %p32_p0 = scmp.ge.s32.totalorder %s30_s26, 2  ;;  %p161_p1 = scmp.ne.s32.totalorder %s744_s20, %s740_s19 }
   0x7   : > { %p162_p2 = scmp.eq.s32.totalorder %s588_s24, 1  ;;  %p167_p3 = scmp.ne.s32.totalorder %s740_s19, %s736_s18 }
   0x8   : > { %s947_s26 = smov (%p32_p0, %s30_s26), 0  ;;  %p168_p5 = scmp.eq.s32.totalorder %s589_s25, 1 }
   0x9   : > { %p831_p4 = por %p162_p2, %p161_p1  ;;  %s146_s29 = ssub.s32 %s752_s22, %s947_s26 }
   0xa   : > { %p592_p6 = scmp.ge.s32.totalorder %s756_s23, 1  ;;  %p149_p7 = scmp.eq.s32.totalorder %s146_s29, 0 }
   0xb   : > { %p838_p8 = por %p168_p5, %p167_p3  ;;  %p211_p9 = scmp.lt.s32.totalorder %s756_s23, 3 }
   0xc   : > { %s844_s6 = scalar_select %p149_p7, %s744_s20, %s151_s27  }
   0xd   : > { %p212_p10 = pnand %p592_p6, %p211_p9 }
   0xe   : > { %p244_p11 = scmp.lt.s32.totalorder (!%p212_p10), %s748_s21, 1  ;;  %v758_v0 = vmov (!%p212_p10), 0.0   ;;  %v259_v1 = vld [vmem:[%s935_s2] sm:$0xff] (!%p212_p10)  ;;  %v759_v2 = vmov (!%p212_p10), 0   ;;  %v261_v3 = vld [vmem:[%s935_s2 + $0x10] sm:$0xff] (!%p212_p10)  ;;  %v260_v4 = vld [vmem:[%s935_s2 + $0x8] sm:$0xff] (!%p212_p10) }
   0xf   : > { %215 = sbr.rel (%p212_p10) target bundleno = 499 (0x1f3), region = 40  ;;  %367 = vmatprep.mubr.f32.mxu0 (!%p212_p10), %v758_v0  ;;  %483 = vmatprep.mubr.f32.mxu1 (!%p212_p10), %v758_v0  ;;  %v262_v5 = vld [vmem:[%s935_s2 + $0x18] sm:$0xff] (!%p212_p10)  ;;  %vm298_vm0 = vcmask (!%p212_p10), 1043456   ;;  %v255_v8 = vld [vmem:[%s934_s1] sm:$0xff] (!%p212_p10)  ;;  %vm285_vm1 = vcmask (!%p212_p10), 31744   ;;  %v256_v10 = vld [vmem:[%s934_s1 + $0x8] sm:$0xff] (!%p212_p10) }
  0x10   : > { %675 = vset.pattern.permute.xlu0 (!%p212_p10), %v759_v2  ;;  %676 = vset.pattern.permute.xlu1 (!%p212_p10), %v759_v2  ;;  %v409_v9 = vld [vmem:[%s937_s4] sm:$0xf] (!%p212_p10)  ;;  %v257_v11 = vld [vmem:[%s934_s1 + $0x10] sm:$0xff] (!%p212_p10)  ;;  %v258_v12 = vld [vmem:[%s934_s1 + $0x18] sm:$0xff] (!%p212_p10)  ;;  %vm415_vm2 = vcmask (!%p212_p10), 261120   ;;  %s240_s17 = sand.u32 (!%p212_p10), 1, %s740_s19  }
  0x11   : > { %265 = vperm.xlu0 (!%p212_p10), %675, %v259_v1   ;;  %275 = vperm.xlu1 (!%p212_p10), %676, %v261_v3   ;;  %v408_v53 = vld [vmem:[%s936_s3] sm:$0xf] (!%p212_p10)  ;;  %s593_s24 = sshll.u32 (!%p212_p10), %s240_s17, 3  ;;  %s496_s10 = scalar_lea.sflag (!%p212_p10), [#allocation3], %s240_s17 }
  0x12   : > { %s242_s27 = scalar_lea.vmem (!%p212_p10), [#allocation2], %s593_s24 }
  0x13   : > { %s512_s29 = sshll.u32 (!%p212_p10), %s242_s27, 4  ;;  %s888_s29 = int_to_ptr.vmem [resolvable:$true] %s512_s29 }
  0x14   : > { %s678_s11 = scalar_lea.vmem (!%p212_p10), %s888_s29, 128 }
  0x15   : > { %270 = vperm.xlu0 (!%p212_p10), %675, %v260_v4   ;;  %280 = vperm.xlu1 (!%p212_p10), %676, %v262_v5   ;;  %p679_p12 = scmp.ne.s32.totalorder (!%p212_p10), %s888_s29, %s678_s11 }
  0x16   : > { %s245_s9 = scalar_select %p244_p11, %s748_s21, 1 }
  0x17   : > { %p680_p13 = pnand %p679_p12, %p831_p4 }
  0x18   : > { %s608_s12 = sshll.u32 %s245_s9, 3 }
  0x19   : > { %s251_s25 = scalar_lea.vmem %s933_s0, %s608_s12  ;;  %412 = vperm.xlu0 %675, %v409_v9   ;;  %p681_p0 = pneg %p680_p13 }
  0x1a   : > { %v254_v6 = vld [vmem:[%s251_s25] sm:$0xff]  ;;  %s609_s25 = sshll.u32 %s748_s21, 7  ;;  %s760_s21 = smov [#allocation2]  }
  0x1b   : > { %v284_v7 = vcombine.high %v254_v6, %v254_v6  ;;  %s886_s9 = scalar_lea.hbm %s938_s5, %s609_s25  ;;  %s682_s12 = sshll.u32 %s760_s21, 4  ;;  %s683_s12 = int_to_ptr.vmem [resolvable:$false] %s682_s12 }
  0x1c   : > { %s684_s13 = scalar_lea.vmem %s683_s12, 256  ;;  %p685_p1 = scmp.lt.s32.totalorder %s888_s29, %s683_s12 }
  0x1d   : > { %596 = vmatprep.subr.msk.mxu0 %vm298_vm0, %v284_v7  ;;  %p686_p2 = scmp.lt.s32.totalorder %s684_s13, %s678_s11 }
  0x1e   : > { %597 = vmatpush1.msk.msra.mxu0 %vm298_vm0, %v254_v6 }
  0x1f   : > { %598 = vmatmul.mubr.msk.f32.vlgmr.msra.gmra.mrb[0].mxu0 %vm285_vm1, %v255_v8  ;;  %p687_p3 = por %p686_p2, %p685_p1 }
  0x20   : > { %373 = vmatprep.mubr.f32.mxu0 %v758_v0 }
  0x21   : > { %p688_p5 = pnand %p687_p3, %p681_p0 }
  0x23   : > { %599 = vmatmul.mubr.msk.f32.gmra.mrb[2].mxu0 %vm285_vm1, %v256_v10 }
  0x24   : > { %379 = vmatprep.mubr.f32.mxu0 %v758_v0 }
  0x27   : > { %600 = vmatmul.mubr.msk.f32.gmra.mrb[4].mxu0 %vm285_vm1, %v257_v11 }
  0x28   : > { %385 = vmatprep.mubr.f32.mxu0 %v758_v0 }
  0x2b   : > { %601 = vmatmul.mubr.msk.f32.gmra.mrb[6].mxu0 %vm285_vm1, %v258_v12 }
  0x90   : > { %v266_v13 = vpop.permute.xlu0 %265  ;;  %v276_v24 = vpop.permute.xlu1 %275 }
  0x94   : > { %v271_v18 = vpop.permute.xlu0 %270  ;;  %v281_v37 = vpop.permute.xlu1 %280 }
  0x98   : > { %v413_v54 = vpop.permute.xlu0 %412 }
  0xf2   : > { %v369_v14 = vpop.f32.mrb[0].mxu0 }
  0xf3   : > { %v370_v15 = vadd.f32 %v369_v14, %v266_v13  ;;  %v371_v16 = vpop.f32.mrb[1].mxu0 }
  0xf4   : > { %v372_v17 = vadd.f32 %v371_v16, %v266_v13 }
  0xf5   : > { %v392_v20 = vmax.f32 %v370_v15, 0.0 }
  0xf6   : > { %v375_v19 = vpop.f32.mrb[2].mxu0  ;;  %v393_v23 = vmax.f32 %v372_v17, 0.0 }
  0xf7   : > { %v376_v21 = vadd.f32 %v375_v19, %v271_v18  ;;  %v377_v22 = vpop.f32.mrb[3].mxu0  ;;  %v400_v29 = vmin.f32 %v392_v20, 6.0 }
  0xf8   : > { %v378_v25 = vadd.f32 %v377_v22, %v271_v18  ;;  %v401_v33 = vmin.f32 %v393_v23, 6.0 }
  0xf9   : > { %v394_v26 = vmax.f32 %v376_v21, 0.0 }
  0xfa   : > { %v395_v27 = vmax.f32 %v378_v25, 0.0  ;;  %v381_v28 = vpop.f32.mrb[4].mxu0 }
  0xfb   : > { %v402_v30 = vmin.f32 %v394_v26, 6.0  ;;  %v382_v31 = vadd.f32 %v381_v28, %v276_v24  ;;  %v383_v32 = vpop.f32.mrb[5].mxu0 }
  0xfc   : > { %v403_v34 = vmin.f32 %v395_v27, 6.0  ;;  %v384_v35 = vadd.f32 %v383_v32, %v276_v24 }
  0xfd   : > { %v612_v36 = vpack.c.bf16 %v402_v30, %v400_v29  ;;  %v396_v40 = vmax.f32 %v382_v31, 0.0 }
  0xfe   : > { %v387_v38 = vpop.f32.mrb[6].mxu0  ;;  %v610_v39 = vpack.c.bf16 %v403_v34, %v401_v33  ;;  %v397_v43 = vmax.f32 %v384_v35, 0.0 }
  0xff   : > { %v388_v41 = vadd.f32 %v387_v38, %v281_v37  ;;  %v389_v42 = vpop.f32.mrb[7].mxu0  ;;  %v404_v47 = vmin.f32 %v396_v40, 6.0 }
 0x100   : > { %v390_v44 = vadd.f32 %v389_v42, %v281_v37  ;;  %611 = vmatprep.subr.bf16.mxu1 %v610_v39  ;;  %v405_v49 = vmin.f32 %v397_v43, 6.0 }
 0x101   : > { %v398_v45 = vmax.f32 %v388_v41, 0.0  ;;  %613 = vmatpush1.bf16.msra.mxu1 %v612_v36 }
 0x102   : > { %v399_v46 = vmax.f32 %v390_v44, 0.0 }
 0x103   : > { %v406_v48 = vmin.f32 %v398_v45, 6.0 }
 0x104   : > { %v407_v50 = vmin.f32 %v399_v46, 6.0 }
 0x105   : > { %v616_v51 = vpack.c.bf16 %v406_v48, %v404_v47 }
 0x106   : > { %v614_v52 = vpack.c.bf16 %v407_v50, %v405_v49 }
 0x108   : > { %615 = vmatprep.subr.bf16.mxu1 %v614_v52 }
 0x109   : > { %617 = vmatpush1.bf16.msra.mxu1 %v616_v51 }
 0x10c   : > { %602 = vmatmul.mubr.msk.f32.vlgmr.msra.gmra.mrb[0].mxu1 %vm415_vm2, %v408_v53 }
 0x1df   : > { %v485_v55 = vpop.f32.mrb[0].mxu1 }
 0x1e0   : > { %v486_v56 = vadd.f32 %v485_v55, %v413_v54  ;;  %v487_v57 = vpop.f32.mrb[1].mxu1 }
 0x1e1   : > { %v488_v58 = vadd.f32 %v487_v57, %v413_v54 }
 0x1e3   : > { %v492_v59 = vcombine.low %v486_v56, %v488_v58 }
 0x1e5   : > { %494 = vst [vmem:[%s242_s27] sm:$0xff] %v492_v59 }
 0x1e6   : > { %691 = shalt.err (!%p688_p5)
}
 0x1e7   : > { %s692_s14 = scalar_lea.hbm %s886_s9, 128  ;;  %s696_s17 = scalar_lea.hbm %s938_s5, 256 }
 0x1e8   : > { %p693_p6 = scmp.ne.s32.totalorder %s886_s9, %s692_s14  ;;  %p697_p10 = scmp.lt.u32.totalorder %s886_s9, %s938_s5 }
 0x1e9   : > { %p698_p11 = scmp.lt.u32.totalorder %s696_s17, %s692_s14  ;;  %p700_p13 = scmp.lt.u32.totalorder %s692_s14, %s886_s9 }
 0x1ea   : > { %p694_p7 = pnand %p693_p6, %p831_p4 }
 0x1eb   : > { %p699_p12 = por %p698_p11, %p697_p10 }
 0x1ec   : > { %p695_p9 = pneg %p694_p7 }
 0x1ed   : > { %p701_p0 = por %p700_p13, %p699_p12 }
 0x1ef   : > { %p702_p1 = pnand %p701_p0, %p695_p9 }
 0x1f1   : > { %705 = shalt.err (!%p702_p1)
}
 0x1f2   : > { %618 = dma.vmem_to_hbm [thread:$0]  (%p831_p4), %s888_s29, 128, %s886_s9, %s496_s10  }
 0x1f3 PF: > { %p624_p2 = scmp.ge.s32.totalorder %s756_s23, 2  ;;  %s524_s27 = sand.u32 1, %s736_s18  }
 0x1f4   : > { %s525_s7 = scalar_lea.sflag [#allocation3], %s524_s27 }
 0x1f5   : > { %p621_p3 = pnand %p624_p2, %p838_p8 }
 0x1f7   : > { %731 = dma.done.wait (!%p621_p3), %s525_s7, 128  }
 0x1f8   : > { %733 = vsyncadd (!%p621_p3), %s525_s7, 4294967168  ;;  %s18_s23 = sadd.s32 1, %s756_s23   ;;  %s941_s18 = smov %s740_s19 }
 0x1f9   : > { %p15_p5 = scmp.ge.s32.totalorder %s18_s23, 4   ;;  %s942_s19 = smov %s744_s20 }
 0x1fa   : > { %s943_s20 = smov %s844_s6  ;;  %s944_s21 = smov %s752_s22 }
 0x1fb   : > { %s945_s22 = smov %s947_s26  ;;  %17 = sbr.rel (!%p15_p5) target bundleno = 4 (0x4), region = 75 }
 0x202   :  { %530 = vsyncpa [#allocation3], 1 }
 0x203   :  { %532 = vsyncpa [#allocation3 + $0x1], 1 }

</bundles_post_ra>
